<compile_context>
chip_gen: v6e
topology: v6e:2x2x1
jax: 0.10.0
libtpu: 0.0.40
codegen_flags: <defaults>
</compile_context>

<pallas_src>
import functools

import jax
import jax.numpy as jnp
from jax.experimental import pallas as pl
from jax.experimental.pallas import tpu as pltpu


def _round_up(v: int, m: int) -> int:
    return ((v + m - 1) // m) * m


def _make_linear_kernel(scaling_factor: float, use_bias: bool):
    sf = float(scaling_factor)

    if use_bias:
        def kernel(x_ref, w_ref, b_ref, o_ref, acc_ref):
            k = pl.program_id(2)

            @pl.when(k == 0)
            def _():
                acc_ref[...] = jnp.zeros_like(acc_ref)

            # Inner loop stays MXU-only: just the accumulate.
            acc_ref[...] += jnp.dot(
                x_ref[...], w_ref[...], preferred_element_type=jnp.float32
            )

            @pl.when(k == pl.num_programs(2) - 1)
            def _():
                acc = acc_ref[...]
                if sf != 1.0:  # static Python check, baked at trace time
                    acc = acc * jnp.float32(sf)
                acc = acc + b_ref[...].astype(jnp.float32)  # (1, tn) broadcast
                o_ref[...] = acc.astype(o_ref.dtype)

        return kernel

    def kernel(x_ref, w_ref, o_ref, acc_ref):
        k = pl.program_id(2)

        @pl.when(k == 0)
        def _():
            acc_ref[...] = jnp.zeros_like(acc_ref)

        acc_ref[...] += jnp.dot(
            x_ref[...], w_ref[...], preferred_element_type=jnp.float32
        )

        @pl.when(k == pl.num_programs(2) - 1)
        def _():
            acc = acc_ref[...]
            if sf != 1.0:
                acc = acc * jnp.float32(sf)
            o_ref[...] = acc.astype(o_ref.dtype)

    return kernel


def linear_layer(
    x,
    weights,
    bias=None,
    scaling_factor=1.0,
    *,
    compute_dtype=None,   # e.g. jnp.bfloat16 for MXU-native inputs (f32 acc kept)
    tm_max=256,
    tn_max=256,
    tk_max=512,
):
    """Pallas implementation of LinearLayer.forward.

    x:       [..., in_dim]
    weights: [in_dim, out_dim]
    bias:    [out_dim] or None
    """
    in_dim, out_dim = weights.shape
    leading = x.shape[:-1]
    m = 1
    for d in leading:
        m *= d
    out_dtype = x.dtype

    x2d = x.reshape(m, in_dim)
    if compute_dtype is not None:
        x2d = x2d.astype(compute_dtype)
        weights = weights.astype(compute_dtype)

    # --- tile sizes (MXU/lane aligned), shrunk for small problems ------------
    tm = tm_max if m >= tm_max else _round_up(m, 8)
    tn = tn_max if out_dim >= tn_max else _round_up(out_dim, 128)
    tk = tk_max if in_dim >= tk_max else _round_up(in_dim, 128)

    # --- pad to tile multiples (zeros are matmul-neutral; sliced off below) --
    mp = _round_up(m, tm)
    np_ = _round_up(out_dim, tn)
    kp = _round_up(in_dim, tk)

    if (mp, kp) != (m, in_dim):
        x2d = jnp.pad(x2d, ((0, mp - m), (0, kp - in_dim)))
    if (kp, np_) != (in_dim, out_dim):
        weights = jnp.pad(weights, ((0, kp - in_dim), (0, np_ - out_dim)))

    use_bias = bias is not None
    operands = [x2d, weights]
    in_specs = [
        pl.BlockSpec((tm, tk), lambda i, j, k: (i, k)),
        pl.BlockSpec((tk, tn), lambda i, j, k: (k, j)),
    ]
    if use_bias:
        b2d = bias.reshape(1, out_dim)
        if np_ != out_dim:
            b2d = jnp.pad(b2d, ((0, 0), (0, np_ - out_dim)))
        operands.append(b2d)
        in_specs.append(pl.BlockSpec((1, tn), lambda i, j, k: (0, j)))

    kernel = _make_linear_kernel(scaling_factor, use_bias)

    bytes_in = (
        x2d.size * x2d.dtype.itemsize
        + weights.size * weights.dtype.itemsize
        + (operands[2].size * operands[2].dtype.itemsize if use_bias else 0)
    )
    bytes_out = mp * np_ * jnp.dtype(out_dtype).itemsize
    cost = pl.CostEstimate(
        flops=2 * mp * np_ * kp,
        transcendentals=0,
        bytes_accessed=bytes_in + bytes_out,
    )

    out2d = pl.pallas_call(
        kernel,
        out_shape=jax.ShapeDtypeStruct((mp, np_), out_dtype),
        grid_spec=pltpu.PrefetchScalarGridSpec(
            num_scalar_prefetch=0,
            grid=(mp // tm, np_ // tn, kp // tk),
            in_specs=in_specs,
            out_specs=pl.BlockSpec((tm, tn), lambda i, j, k: (i, j)),
            scratch_shapes=[pltpu.VMEM((tm, tn), jnp.float32)],
        ),
        compiler_params=pltpu.CompilerParams(
            dimension_semantics=("parallel", "parallel", "arbitrary"),
            vmem_limit_bytes=48 * 1024 * 1024,
        ),
        cost_estimate=cost,
    )(*operands)

    return out2d[:m, :out_dim].reshape(*leading, out_dim)


def init_linear_params(key, in_dim, out_dim, use_bias=True):
    """glorot_uniform weights (module default), zeros bias."""
    fan_avg = (in_dim + out_dim) / 2.0
    r = jnp.sqrt(3.0 / fan_avg)
    weights = jax.random.uniform(
        key, (in_dim, out_dim), dtype=jnp.float32, minval=-r, maxval=r
    )
    bias = jnp.zeros((out_dim,), dtype=jnp.float32) if use_bias else None
    return weights, bias


if __name__ == "__main__":
    key = jax.random.PRNGKey(0)
    k_x1, k_w1, k_x2, k_w2 = jax.random.split(key, 4)

    # --- check 1: small layer, bias, non-trivial scaling_factor --------------
    batch, seq, in_dim, out_dim = 2, 8, 32, 64
    sf1 = 1.5
    x1 = jax.random.normal(k_x1, (batch, seq, in_dim), dtype=jnp.float32)
    w1, b1 = init_linear_params(k_w1, in_dim, out_dim, use_bias=True)

    y1 = linear_layer(x1, w1, b1, scaling_factor=sf1)
    y1 = jax.block_until_ready(y1)
    y1_ref = jnp.matmul(x1, w1 * sf1, precision=jax.lax.Precision.HIGHEST) + b1
    assert y1.shape == (batch, seq, out_dim)
    assert jnp.allclose(y1, y1_ref, atol=1e-3, rtol=1e-3)

    # --- check 2: multi-step K and N tiling, no bias, scaling applied --------
    in_dim2, out_dim2 = 1024, 384
    sf2 = 0.5
    x2 = jax.random.normal(k_x2, (batch, seq, in_dim2), dtype=jnp.float32)
    w2, _ = init_linear_params(k_w2, in_dim2, out_dim2, use_bias=False)

    y2 = linear_layer(x2, w2, None, scaling_factor=sf2)
    y2 = jax.block_until_ready(y2)
    y2_ref = jnp.matmul(x2, w2 * sf2, precision=jax.lax.Precision.HIGHEST)
    assert y2.shape == (batch, seq, out_dim2)
    assert jnp.allclose(y2, y2_ref, atol=1e-3, rtol=1e-3)

    print("KERNEL_OK")
</pallas_src>

<mosaic_0001>
module attributes {stable_mosaic.version = 11 : i64} {
  func.func @kernel(%arg0: i32, %arg1: i32, %arg2: i32, %arg3: memref<16x128xf32, #tpu.memory_space<vmem>>, %arg4: memref<128x128xf32, #tpu.memory_space<vmem>>, %arg5: memref<1x128xf32, #tpu.memory_space<vmem>>, %arg6: memref<16x128xf32, #tpu.memory_space<vmem>>, %arg7: memref<16x128xf32, #tpu.memory_space<vmem>>) attributes {dimension_semantics = [#tpu.dimension_semantics<parallel>, #tpu.dimension_semantics<parallel>, #tpu.dimension_semantics<arbitrary>], iteration_bounds = array<i64: 1, 1, 1>, scalar_prefetch = 0 : i64, scratch_operands = 1 : i64, tpu.core_type = #tpu.core_type<tc>, window_params = [{transform_indices = @transform_0, window_bounds = array<i64: 16, 128>}, {transform_indices = @transform_1, window_bounds = array<i64: 128, 128>}, {transform_indices = @transform_2, window_bounds = array<i64: 1, 128>}, {transform_indices = @transform_3, window_bounds = array<i64: 16, 128>}]} {
    %c0_i32 = arith.constant 0 : i32
    %0 = arith.cmpi eq, %arg2, %c0_i32 : i32
    %1 = arith.extui %0 : i1 to i32
    %c0_i32_0 = arith.constant 0 : i32
    %2 = arith.cmpi ne, %1, %c0_i32_0 : i32
    scf.if %2 {
      %cst_10 = arith.constant 0.000000e+00 : f32
      %12 = vector.broadcast %cst_10 : f32 to vector<16x128xf32>
      %c0_11 = arith.constant 0 : index
      %c0_12 = arith.constant 0 : index
      %13 = vector.load %arg7[%c0_11, %c0_12] : memref<16x128xf32, #tpu.memory_space<vmem>>, vector<16x128xf32>
      tpu.vector_store %arg7[%c0_11, %c0_12], %12 {strides = array<i32>} : memref<16x128xf32, #tpu.memory_space<vmem>>, vector<16x128xf32>,
    } else {
    }
    %c0 = arith.constant 0 : index
    %c0_1 = arith.constant 0 : index
    %3 = vector.load %arg7[%c0, %c0_1] : memref<16x128xf32, #tpu.memory_space<vmem>>, vector<16x128xf32>
    %c0_2 = arith.constant 0 : index
    %c0_3 = arith.constant 0 : index
    %4 = vector.load %arg3[%c0_2, %c0_3] : memref<16x128xf32, #tpu.memory_space<vmem>>, vector<16x128xf32>
    %c0_4 = arith.constant 0 : index
    %c0_5 = arith.constant 0 : index
    %5 = vector.load %arg4[%c0_4, %c0_5] : memref<128x128xf32, #tpu.memory_space<vmem>>, vector<128x128xf32>
    %cst = arith.constant dense<0.000000e+00> : vector<16x128xf32>
    %6 = tpu.matmul %4, %5, %cst {dimension_numbers = #tpu.dot_dimension_numbers<[1], [0], [0], [1], [0, 0, 1, 1], [], []>} : vector<16x128xf32>, vector<128x128xf32>, vector<16x128xf32> -> vector<16x128xf32>
    %7 = arith.addf %3, %6 : vector<16x128xf32>
    %c0_6 = arith.constant 0 : index
    %c0_7 = arith.constant 0 : index
    %8 = vector.load %arg7[%c0_6, %c0_7] : memref<16x128xf32, #tpu.memory_space<vmem>>, vector<16x128xf32>
    tpu.vector_store %arg7[%c0_6, %c0_7], %7 {strides = array<i32>} : memref<16x128xf32, #tpu.memory_space<vmem>>, vector<16x128xf32>,
    %c0_i32_8 = arith.constant 0 : i32
    %9 = arith.cmpi eq, %arg2, %c0_i32_8 : i32
    %10 = arith.extui %9 : i1 to i32
    %c0_i32_9 = arith.constant 0 : i32
    %11 = arith.cmpi ne, %10, %c0_i32_9 : i32
    scf.if %11 {
      %c0_10 = arith.constant 0 : index
      %c0_11 = arith.constant 0 : index
      %12 = vector.load %arg7[%c0_10, %c0_11] : memref<16x128xf32, #tpu.memory_space<vmem>>, vector<16x128xf32>
      %cst_12 = arith.constant 1.500000e+00 : f32
      %13 = vector.broadcast %cst_12 : f32 to vector<16x128xf32>
      %14 = arith.mulf %12, %13 : vector<16x128xf32>
      %c0_13 = arith.constant 0 : index
      %c0_14 = arith.constant 0 : index
      %15 = vector.load %arg5[%c0_13, %c0_14] : memref<1x128xf32, #tpu.memory_space<vmem>>, vector<1x128xf32>
      %16 = vector.broadcast %15 : vector<1x128xf32> to vector<16x128xf32>
      %17 = arith.addf %14, %16 : vector<16x128xf32>
      %c0_15 = arith.constant 0 : index
      %c0_16 = arith.constant 0 : index
      %18 = vector.load %arg6[%c0_15, %c0_16] : memref<16x128xf32, #tpu.memory_space<vmem>>, vector<16x128xf32>
      tpu.vector_store %arg6[%c0_15, %c0_16], %17 {strides = array<i32>} : memref<16x128xf32, #tpu.memory_space<vmem>>, vector<16x128xf32>,
    } else {
    }
    return
  }
  func.func @transform_0(%arg0: i32, %arg1: i32, %arg2: i32) -> (i32, i32) {
    %c0_i32 = arith.constant 0 : i32
    return %arg0, %arg2 : i32, i32
  }
  func.func @transform_1(%arg0: i32, %arg1: i32, %arg2: i32) -> (i32, i32) {
    %c0_i32 = arith.constant 0 : i32
    return %arg2, %arg1 : i32, i32
  }
  func.func @transform_2(%arg0: i32, %arg1: i32, %arg2: i32) -> (i32, i32) {
    %c0_i32 = arith.constant 0 : i32
    %c0_i32_0 = arith.constant 0 : i32
    return %c0_i32, %arg1 : i32, i32
  }
  func.func @transform_3(%arg0: i32, %arg1: i32, %arg2: i32) -> (i32, i32) {
    %c0_i32 = arith.constant 0 : i32
    return %arg0, %arg1 : i32, i32
  }
}

</mosaic_0001>

<bundles_post_ra>
// kernel: tpu_custom_call.1
= control target key start
LH: loop header
LB: loop body
LE: loop exit
PB: predicated region body
PF: predicated region fallthrough
CT: control target
= control target key end

     0   :  { %8 = vsyncpa [#allocation4], 0  ;;  %s355_s0 = inlined_call_operand.hbm [shape: f32[16,128], index: 0, kind: input, shape index: {}]   ;;  %s356_s1 = inlined_call_operand.hbm [shape: f32[128,128], index: 1, kind: input, shape index: {}]   ;;  %s357_s2 = inlined_call_operand.vmem [shape: f32[1,128], index: 2, kind: input, shape index: {}]   ;;  %s358_s3 = inlined_call_operand.hbm [shape: f32[16,128], index: 3, kind: output, shape index: {}]  }
   0x1   :  { %9 = vsyncpa [#allocation7], 0 }
   0x2   :  { %10 = vsyncpa [#allocation5], 0  ;;  %s309_s12 = smov [#allocation3]  }
   0x3   :  { %s16_s13 = sshll.u32 %s309_s12, 4  ;;  %s17_s13 = int_to_ptr.vmem [resolvable:$true] %s16_s13 }
   0x4   :  { %s251_s14 = scalar_lea.vmem %s17_s13, 256  ;;  %p256_p1 = scmp.lt.s32.totalorder %s17_s13, %s17_s13 }
   0x5   :  { %p252_p0 = scmp.ne.s32.totalorder %s17_s13, %s251_s14  ;;  %p257_p2 = scmp.lt.s32.totalorder %s251_s14, %s251_s14 }
   0x7   :  { %p258_p3 = por %p257_p2, %p256_p1 }
   0x9   :  { %p259_p4 = pnand %p258_p3, %p252_p0 }
   0xb   :  { %262 = shalt.err (!%p259_p4)
}
   0xc   :  { %s310_s15 = smov 128   ;;  %s311_s16 = smov 8  }
   0xd   :  { %22 = dma.hbm_to_vmem [thread:$0]  %s355_s0, 256, %s17_s13, [#allocation4], %s310_s15, %s310_s15, %s311_s16  }
   0xe   :  { %s312_s19 = smov [#allocation6]  }
   0xf   :  { %s28_s20 = sshll.u32 %s312_s19, 4  ;;  %s29_s20 = int_to_ptr.vmem [resolvable:$true] %s28_s20 }
  0x10   :  { %s271_s21 = scalar_lea.vmem %s29_s20, 2048  ;;  %p276_p6 = scmp.lt.s32.totalorder %s29_s20, %s29_s20 }
  0x11   :  { %p272_p5 = scmp.ne.s32.totalorder %s29_s20, %s271_s21  ;;  %p277_p7 = scmp.lt.s32.totalorder %s271_s21, %s271_s21 }
  0x13   :  { %p278_p8 = por %p277_p7, %p276_p6 }
  0x15   :  { %p279_p9 = pnand %p278_p8, %p272_p5 }
  0x17   :  { %282 = shalt.err (!%p279_p9)
}
  0x18   :  { %34 = dma.hbm_to_vmem [thread:$0]  %s356_s1, 2048, %s29_s20, [#allocation7], %s310_s15, %s310_s15, %s311_s16  }
  0x19   :  { %303 = dma.done.wait [#allocation4], 256  }
  0x1a   :  { %304 = vsyncadd [#allocation4], 4294967040 }
  0x1b   :  { %305 = dma.done.wait [#allocation7], 2048  }
  0x1c   :  { %306 = vsyncadd [#allocation7], 4294965248  ;;  %v68_v0 = vld [vmem:[#allocation6 + $0x78] sm:$0xff]  ;;  %v67_v1 = vld [vmem:[#allocation6 + $0x70] sm:$0xff]  ;;  %s313_s24 = smov [#allocation8]  }
  0x1d   :  { %203 = vmatprep.subr.mxu0 %v68_v0  ;;  %v66_v2 = vld [vmem:[#allocation6 + $0x68] sm:$0xff]  ;;  %v65_v3 = vld [vmem:[#allocation6 + $0x60] sm:$0xff]  ;;  %v51_v4 = vld [vmem:[#allocation3] sm:$0xff]  ;;  %s171_s25 = sshll.u32 %s313_s24, 4  ;;  %s172_s25 = int_to_ptr.vmem [resolvable:$true] %s171_s25 }
  0x1e   :  { %204 = vmatpush3.msra.mxu0 %v68_v0  ;;  %v64_v5 = vld [vmem:[#allocation6 + $0x58] sm:$0xff]  ;;  %235 = vmatprep.mubr.f32.mxu0 %v51_v4  ;;  %v63_v6 = vld [vmem:[#allocation6 + $0x50] sm:$0xff]  ;;  %v62_v7 = vld [vmem:[#allocation6 + $0x48] sm:$0xff]  ;;  %s283_s26 = scalar_lea.vmem %s172_s25, 256  ;;  %p288_p11 = scmp.lt.s32.totalorder %s172_s25, %s172_s25 }
  0x1f   :  { %205 = vmatprep.subr.mxu0 %v67_v1  ;;  %v61_v8 = vld [vmem:[#allocation6 + $0x40] sm:$0xff]  ;;  %v60_v9 = vld [vmem:[#allocation6 + $0x38] sm:$0xff]  ;;  %v59_v10 = vld [vmem:[#allocation6 + $0x30] sm:$0xff]  ;;  %p284_p10 = scmp.ne.s32.totalorder %s172_s25, %s283_s26  ;;  %p289_p12 = scmp.lt.s32.totalorder %s283_s26, %s283_s26 }
  0x20   :  { %206 = vmatpush3.msra.mxu0 %v67_v1  ;;  %v58_v11 = vld [vmem:[#allocation6 + $0x28] sm:$0xff]  ;;  %v57_v12 = vld [vmem:[#allocation6 + $0x20] sm:$0xff]  ;;  %v56_v13 = vld [vmem:[#allocation6 + $0x18] sm:$0xff] }
  0x21   :  { %207 = vmatprep.subr.mxu0 %v66_v2  ;;  %v55_v14 = vld [vmem:[#allocation6 + $0x10] sm:$0xff]  ;;  %v54_v15 = vld [vmem:[#allocation6 + $0x8] sm:$0xff]  ;;  %v53_v16 = vld [vmem:[#allocation6] sm:$0xff]  ;;  %p290_p13 = por %p289_p12, %p288_p11 }
  0x22   :  { %208 = vmatpush3.msra.mxu0 %v66_v2  ;;  %v52_v17 = vld [vmem:[#allocation3 + $0x8] sm:$0xff]  ;;  %v184_v19 = vld [vmem:[%s357_s2] ss:$0 sm:$0xff] }
  0x23   :  { %209 = vmatprep.subr.mxu0 %v65_v3  ;;  %p291_p0 = pnand %p290_p13, %p284_p10 }
  0x24   :  { %210 = vmatpush3.msra.mxu0 %v65_v3 }
  0x25   :  { %211 = vmatprep.subr.mxu0 %v64_v5 }
  0x26   :  { %212 = vmatpush3.msra.mxu0 %v64_v5 }
  0x27   :  { %213 = vmatprep.subr.mxu0 %v63_v6 }
  0x28   :  { %214 = vmatpush3.msra.mxu0 %v63_v6 }
  0x29   :  { %215 = vmatprep.subr.mxu0 %v62_v7 }
  0x2a   :  { %216 = vmatpush3.msra.mxu0 %v62_v7 }
  0x2b   :  { %217 = vmatprep.subr.mxu0 %v61_v8 }
  0x2c   :  { %218 = vmatpush3.msra.mxu0 %v61_v8 }
  0x2d   :  { %219 = vmatprep.subr.mxu0 %v60_v9 }
  0x2e   :  { %220 = vmatpush3.msra.mxu0 %v60_v9 }
  0x2f   :  { %221 = vmatprep.subr.mxu0 %v59_v10 }
  0x30   :  { %222 = vmatpush3.msra.mxu0 %v59_v10 }
  0x31   :  { %223 = vmatprep.subr.mxu0 %v58_v11 }
  0x32   :  { %224 = vmatpush3.msra.mxu0 %v58_v11 }
  0x33   :  { %225 = vmatprep.subr.mxu0 %v57_v12 }
  0x34   :  { %226 = vmatpush3.msra.mxu0 %v57_v12 }
  0x35   :  { %227 = vmatprep.subr.mxu0 %v56_v13 }
  0x36   :  { %228 = vmatpush3.msra.mxu0 %v56_v13 }
  0x37   :  { %229 = vmatprep.subr.mxu0 %v55_v14 }
  0x38   :  { %230 = vmatpush3.msra.mxu0 %v55_v14 }
  0x39   :  { %231 = vmatprep.subr.mxu0 %v54_v15 }
  0x3a   :  { %232 = vmatpush3.msra.mxu0 %v54_v15 }
  0x3b   :  { %233 = vmatprep.subr.mxu0 %v53_v16 }
  0x3c   :  { %234 = vmatpush3.msra.mxu0 %v53_v16 }
  0x3d   :  { %236 = vmatmul.mubr.f32.vlgmr.msra.gmra.mxu0 %v52_v17 }
  0xfd   :  { %v237_v18 = vpop.f32.mrf.mxu0 }
  0xfe   :  { %v154_v20 = vmul.f32 1.5, %v237_v18 }
  0xff   :  { %v135_v21 = vpop.f32.mrf.mxu0 }
 0x100   :  { %v163_v22 = vadd.f32 %v184_v19, %v154_v20  ;;  %v153_v23 = vmul.f32 1.5, %v135_v21 }
 0x102   :  { %165 = vst [vmem:[#allocation8 + $0x8] sm:$0xff] %v163_v22  ;;  %v162_v24 = vadd.f32 %v184_v19, %v153_v23 }
 0x104   :  { %164 = vst [vmem:[#allocation8] sm:$0xff] %v162_v24 }
 0x105   :  { %294 = shalt.err (!%p291_p0)
}
 0x106   :  { %177 = dma.vmem_to_hbm [thread:$0]  %s172_s25, 256, %s358_s3, [#allocation5], %s310_s15, %s310_s15, %s311_s16  }
 0x107   :  { %307 = dma.done.wait [#allocation5], 256  }
 0x108   :  { %308 = vsyncadd [#allocation5], 4294967040 }
 0x109   :  { %181 = vsyncpa [#allocation4], 1 }
 0x10a   :  { %182 = vsyncpa [#allocation7], 1 }
 0x10b   :  { %183 = vsyncpa [#allocation5], 1 }

</bundles_post_ra>
